<compile_context>
chip_gen: v6e
topology: v6e:2x2x1
jax: 0.10.0
libtpu: 0.0.40
codegen_flags: <defaults>
</compile_context>

<pallas_src>
import functools

import jax
import jax.numpy as jnp
from jax.experimental import pallas as pl
from jax.experimental.pallas import tpu as pltpu


def _round_up(a, m):
    return (a + m - 1) // m * m


def _sublane_multiple(dtype):
    # Rows per packed sublane tile: 8 for 32-bit, 16 for 16-bit, 32 for 8-bit.
    return 8 * max(1, 4 // jnp.dtype(dtype).itemsize)


def _pick_row_tile(n_rows, dtype, row_tile):
    sub = _sublane_multiple(dtype)
    if n_rows <= sub:
        return sub
    # At least 2 grid steps so both v7x TensorCores get a row tile.
    tm = min(row_tile, _round_up(-(-n_rows // 2), sub))
    if tm >= 256:
        tm -= tm % 128  # MXU-friendly M for large tiles
    return max(tm, sub)


def _classification_head_kernel(x_ref, w1_ref, b1_ref, w2_ref, b2_ref, o_ref,
                                *, precision=None):
    # x_ref : [TM, Dk]  activation row tile (native / MXU dtype)
    # w1_ref: [Dk, Dk]  dense weight, pre-transposed (x @ w1)
    # b1_ref: [1,  Dk]  f32
    # w2_ref: [Dk, L ]  out_proj weight, pre-transposed
    # b2_ref: [1,  L ]  f32
    # o_ref : [TM, L ]
    x = x_ref[...]

    # dropout (eval mode) -> identity
    h = jnp.dot(x, w1_ref[...], preferred_element_type=jnp.float32,
                precision=precision)
    h = jnp.tanh(h + b1_ref[...])          # bias add (VALU) + tanh (EUP) in f32

    # dropout (eval mode) -> identity
    h = h.astype(w2_ref.dtype)             # keep MXU operands in native dtype
    out = jnp.dot(h, w2_ref[...], preferred_element_type=jnp.float32,
                  precision=precision)
    out = out + b2_ref[...]

    o_ref[...] = out.astype(o_ref.dtype)


def prepare_classification_head_params(dense_w, dense_b, out_w, out_b,
                                        mxu_dtype=None):
    """One-time weight layout prep (hoist out of the per-call path).

    dense_w: [D, D], dense_b: [D], out_w: [L, D], out_b: [L]  (PyTorch layout).
    Returns (w1 [Dk, Dk], b1 [1, Dk], w2 [Dk, L], b2 [1, L]) with Dk = D when D
    is a multiple of 128, else D rounded up to 128 (zero padded — exact: padded
    h columns are tanh(0 + 0) = 0 and hit zero rows of w2).
    `mxu_dtype` (e.g. jnp.bfloat16) casts the MXU operands; recommended on v5e.
    """
    d_model = dense_w.shape[1]
    num_labels = out_w.shape[0]
    dk = d_model if d_model % 128 == 0 else _round_up(d_model, 128)
    w_dtype = mxu_dtype if mxu_dtype is not None else dense_w.dtype

    w1 = dense_w.T.astype(w_dtype)
    w2 = out_w.T.astype(w_dtype)
    b1 = dense_b.astype(jnp.float32)
    if dk != d_model:
        pad = dk - d_model
        w1 = jnp.pad(w1, ((0, pad), (0, pad)))
        w2 = jnp.pad(w2, ((0, pad), (0, 0)))
        b1 = jnp.pad(b1, (0, pad))
    b1 = b1.reshape(1, dk)
    b2 = out_b.astype(jnp.float32).reshape(1, num_labels)
    return w1, b1, w2, b2


def _build_and_run(x2d, w1, b1, w2, b2, *, tm, out_dtype, vmem_limit, cost,
                   precision, single_buffer_weights):
    n_rows, dk = x2d.shape
    num_labels = w2.shape[1]
    grid = (pl.cdiv(n_rows, tm),)

    def resident(shape):
        # Constant-index blocks stay VMEM-resident; single-buffering them
        # halves the weight footprint (matters on v7x's 64 MiB VMEM).
        kwargs = {}
        if single_buffer_weights:
            kwargs["pipeline_mode"] = pl.Buffered(1)
        return pl.BlockSpec(shape, lambda i: (0,) * len(shape), **kwargs)

    kernel = functools.partial(_classification_head_kernel, precision=precision)

    return pl.pallas_call(
        kernel,
        out_shape=jax.ShapeDtypeStruct((n_rows, num_labels), out_dtype),
        grid=grid,
        in_specs=[
            pl.BlockSpec((tm, dk), lambda i: (i, 0)),   # x row tile (pipelined)
            resident((dk, dk)),                         # w1
            resident((1, dk)),                          # b1
            resident((dk, num_labels)),                 # w2
            resident((1, num_labels)),                  # b2
        ],
        out_specs=pl.BlockSpec((tm, num_labels), lambda i: (i, 0)),
        compiler_params=pltpu.CompilerParams(
            dimension_semantics=("parallel",),
            vmem_limit_bytes=vmem_limit),
        cost_estimate=cost,
    )(x2d, w1, b1, w2, b2)


def classification_head(hidden_states, params, *, row_tile=512, precision=None):
    """Apply the head. `params` from prepare_classification_head_params()."""
    w1, b1, w2, b2 = params
    dk = w1.shape[0]
    num_labels = w2.shape[1]

    orig_shape = hidden_states.shape
    d_model = orig_shape[-1]
    out_dtype = hidden_states.dtype

    x2d = hidden_states.reshape(-1, d_model)
    n_rows = x2d.shape[0]

    if x2d.dtype != w1.dtype:
        x2d = x2d.astype(w1.dtype)          # e.g. bf16 MXU operands on v5e
    if dk != d_model:
        # Fallback only for lane-misaligned D: one fused pad of the feature dim
        # (128-aligned D streams straight from HBM with no extra copy pass).
        x2d = jnp.pad(x2d, ((0, 0), (0, dk - d_model)))

    tm = _pick_row_tile(n_rows, x2d.dtype, row_tile)

    # VMEM budget: single-buffered resident weights + double-buffered x / out
    # row tiles + headroom.
    def nbytes(a):
        return a.size * a.dtype.itemsize

    resident_bytes = nbytes(w1) + nbytes(b1) + nbytes(w2) + nbytes(b2)
    stream_bytes = (2 * tm * dk * x2d.dtype.itemsize
                    + 2 * tm * num_labels * jnp.dtype(out_dtype).itemsize)
    vmem_limit = int(resident_bytes + stream_bytes) + (8 << 20)
    vmem_limit = min(max(vmem_limit, 32 << 20), 120 << 20)

    cost = pl.CostEstimate(
        flops=2 * n_rows * dk * (dk + num_labels),
        transcendentals=n_rows * dk,
        bytes_accessed=int(n_rows * dk * x2d.dtype.itemsize + resident_bytes
                           + n_rows * num_labels * jnp.dtype(out_dtype).itemsize),
    )

    try:
        out2d = _build_and_run(x2d, w1, b1, w2, b2, tm=tm, out_dtype=out_dtype,
                               vmem_limit=vmem_limit, cost=cost,
                               precision=precision, single_buffer_weights=True)
    except Exception:  # pragma: no cover — jax without BlockSpec pipeline_mode
        out2d = _build_and_run(x2d, w1, b1, w2, b2, tm=tm, out_dtype=out_dtype,
                               vmem_limit=vmem_limit, cost=cost,
                               precision=precision, single_buffer_weights=False)

    return out2d.reshape(*orig_shape[:-1], num_labels)


if __name__ == "__main__":
    # Small config consistent with the module: d_model=32, num_labels=4.
    batch, seq, d_model, num_labels = 2, 8, 32, 4

    key = jax.random.PRNGKey(0)
    k_x, k_w1, k_b1, k_w2, k_b2 = jax.random.split(key, 5)

    hidden_states = jax.random.normal(k_x, (batch, seq, d_model), dtype=jnp.float32)
    dense_w = jax.random.normal(k_w1, (d_model, d_model), dtype=jnp.float32) * 0.05
    dense_b = jax.random.normal(k_b1, (d_model,), dtype=jnp.float32) * 0.05
    out_w = jax.random.normal(k_w2, (num_labels, d_model), dtype=jnp.float32) * 0.05
    out_b = jax.random.normal(k_b2, (num_labels,), dtype=jnp.float32) * 0.05

    # Weight layout prep happens once (amortized across calls in real use).
    params = prepare_classification_head_params(dense_w, dense_b, out_w, out_b)

    out = classification_head(hidden_states, params)
    out = jax.block_until_ready(out)

    # Pure-JAX reference of the same math (dropout = identity in eval).
    ref = jnp.tanh(hidden_states @ dense_w.T + dense_b) @ out_w.T + out_b
    assert out.shape == (batch, seq, num_labels)
    assert jnp.allclose(out, ref, atol=1e-5, rtol=1e-5), \
        float(jnp.max(jnp.abs(out - ref)))

    print("KERNEL_OK")
</pallas_src>

<mosaic_0001>
module attributes {stable_mosaic.version = 11 : i64} {
  func.func @_classification_head_kernel(%arg0: i32, %arg1: memref<8x128xf32, #tpu.memory_space<vmem>>, %arg2: memref<128x128xf32, #tpu.memory_space<vmem>>, %arg3: memref<1x128xf32, #tpu.memory_space<vmem>>, %arg4: memref<128x4xf32, #tpu.memory_space<vmem>>, %arg5: memref<1x4xf32, #tpu.memory_space<vmem>>, %arg6: memref<8x4xf32, #tpu.memory_space<vmem>>) attributes {dimension_semantics = [#tpu.dimension_semantics<parallel>], iteration_bounds = array<i64: 2>, scalar_prefetch = 0 : i64, scratch_operands = 0 : i64, tpu.core_type = #tpu.core_type<tc>, window_params = [{transform_indices = @transform_0, window_bounds = array<i64: 8, 128>}, {pipeline_mode = #tpu.pipeline_mode<synchronous>, transform_indices = @transform_1, window_bounds = array<i64: 128, 128>}, {pipeline_mode = #tpu.pipeline_mode<synchronous>, transform_indices = @transform_2, window_bounds = array<i64: 1, 128>}, {pipeline_mode = #tpu.pipeline_mode<synchronous>, transform_indices = @transform_3, window_bounds = array<i64: 128, 4>}, {pipeline_mode = #tpu.pipeline_mode<synchronous>, transform_indices = @transform_4, window_bounds = array<i64: 1, 4>}, {transform_indices = @transform_5, window_bounds = array<i64: 8, 4>}]} {
    %c0 = arith.constant 0 : index
    %c0_0 = arith.constant 0 : index
    %0 = vector.load %arg1[%c0, %c0_0] : memref<8x128xf32, #tpu.memory_space<vmem>>, vector<8x128xf32>
    %c0_1 = arith.constant 0 : index
    %c0_2 = arith.constant 0 : index
    %1 = vector.load %arg2[%c0_1, %c0_2] : memref<128x128xf32, #tpu.memory_space<vmem>>, vector<128x128xf32>
    %cst = arith.constant dense<0.000000e+00> : vector<8x128xf32>
    %2 = tpu.matmul %0, %1, %cst {dimension_numbers = #tpu.dot_dimension_numbers<[1], [0], [0], [1], [0, 0, 1, 1], [], []>} : vector<8x128xf32>, vector<128x128xf32>, vector<8x128xf32> -> vector<8x128xf32>
    %c0_3 = arith.constant 0 : index
    %c0_4 = arith.constant 0 : index
    %3 = vector.load %arg3[%c0_3, %c0_4] : memref<1x128xf32, #tpu.memory_space<vmem>>, vector<1x128xf32>
    %4 = vector.broadcast %3 : vector<1x128xf32> to vector<8x128xf32>
    %5 = arith.addf %2, %4 : vector<8x128xf32>
    %6 = math.tanh %5 : vector<8x128xf32>
    %c0_5 = arith.constant 0 : index
    %c0_6 = arith.constant 0 : index
    %7 = vector.load %arg4[%c0_5, %c0_6] : memref<128x4xf32, #tpu.memory_space<vmem>>, vector<128x4xf32>
    %cst_7 = arith.constant dense<0.000000e+00> : vector<8x4xf32>
    %8 = tpu.matmul %6, %7, %cst_7 {dimension_numbers = #tpu.dot_dimension_numbers<[1], [0], [0], [1], [0, 0, 1, 1], [], []>} : vector<8x128xf32>, vector<128x4xf32>, vector<8x4xf32> -> vector<8x4xf32>
    %c0_8 = arith.constant 0 : index
    %c0_9 = arith.constant 0 : index
    %9 = vector.load %arg5[%c0_8, %c0_9] : memref<1x4xf32, #tpu.memory_space<vmem>>, vector<1x4xf32>
    %10 = vector.broadcast %9 : vector<1x4xf32> to vector<8x4xf32>
    %11 = arith.addf %8, %10 : vector<8x4xf32>
    %c0_10 = arith.constant 0 : index
    %c0_11 = arith.constant 0 : index
    %12 = vector.load %arg6[%c0_10, %c0_11] : memref<8x4xf32, #tpu.memory_space<vmem>>, vector<8x4xf32>
    tpu.vector_store %arg6[%c0_10, %c0_11], %11 {strides = array<i32>} : memref<8x4xf32, #tpu.memory_space<vmem>>, vector<8x4xf32>,
    return
  }
  func.func @transform_0(%arg0: i32) -> (i32, i32) {
    %c0_i32 = arith.constant 0 : i32
    %c0_i32_0 = arith.constant 0 : i32
    return %arg0, %c0_i32 : i32, i32
  }
  func.func @transform_1(%arg0: i32) -> (i32, i32) {
    %c0_i32 = arith.constant 0 : i32
    %c0_i32_0 = arith.constant 0 : i32
    %c0_i32_1 = arith.constant 0 : i32
    return %c0_i32, %c0_i32_0 : i32, i32
  }
  func.func @transform_2(%arg0: i32) -> (i32, i32) {
    %c0_i32 = arith.constant 0 : i32
    %c0_i32_0 = arith.constant 0 : i32
    %c0_i32_1 = arith.constant 0 : i32
    return %c0_i32, %c0_i32_0 : i32, i32
  }
  func.func @transform_3(%arg0: i32) -> (i32, i32) {
    %c0_i32 = arith.constant 0 : i32
    %c0_i32_0 = arith.constant 0 : i32
    %c0_i32_1 = arith.constant 0 : i32
    return %c0_i32, %c0_i32_0 : i32, i32
  }
  func.func @transform_4(%arg0: i32) -> (i32, i32) {
    %c0_i32 = arith.constant 0 : i32
    %c0_i32_0 = arith.constant 0 : i32
    %c0_i32_1 = arith.constant 0 : i32
    return %c0_i32, %c0_i32_0 : i32, i32
  }
  func.func @transform_5(%arg0: i32) -> (i32, i32) {
    %c0_i32 = arith.constant 0 : i32
    %c0_i32_0 = arith.constant 0 : i32
    return %arg0, %c0_i32 : i32, i32
  }
}

module attributes {stable_mosaic.version = 11 : i64} {
  func.func @_classification_head_kernel(%arg0: i32, %arg1: memref<8x128xf32, #tpu.memory_space<vmem>>, %arg2: memref<128x128xf32, #tpu.memory_space<vmem>>, %arg3: memref<1x128xf32, #tpu.memory_space<vmem>>, %arg4: memref<128x4xf32, #tpu.memory_space<vmem>>, %arg5: memref<1x4xf32, #tpu.memory_space<vmem>>, %arg6: memref<8x4xf32, #tpu.memory_space<vmem>>) attributes {dimension_semantics = [#tpu.dimension_semantics<parallel>], iteration_bounds = array<i64: 2>, scalar_prefetch = 0 : i64, scratch_operands = 0 : i64, tpu.core_type = #tpu.core_type<tc>, window_params = [{transform_indices = @transform_0, window_bounds = array<i64: 8, 128>}, {pipeline_mode = #tpu.pipeline_mode<synchronous>, transform_indices = @transform_1, window_bounds = array<i64: 128, 128>}, {pipeline_mode = #tpu.pipeline_mode<synchronous>, transform_indices = @transform_2, window_bounds = array<i64: 1, 128>}, {pipeline_mode = #tpu.pipeline_mode<synchronous>, transform_indices = @transform_3, window_bounds = array<i64: 128, 4>}, {pipeline_mode = #tpu.pipeline_mode<synchronous>, transform_indices = @transform_4, window_bounds = array<i64: 1, 4>}, {transform_indices = @transform_5, window_bounds = array<i64: 8, 4>}]} {
    %c0 = arith.constant 0 : index
    %c0_0 = arith.constant 0 : index
    %0 = vector.load %arg1[%c0, %c0_0] : memref<8x128xf32, #tpu.memory_space<vmem>>, vector<8x128xf32>
    %c0_1 = arith.constant 0 : index
    %c0_2 = arith.constant 0 : index
    %1 = vector.load %arg2[%c0_1, %c0_2] : memref<128x128xf32, #tpu.memory_space<vmem>>, vector<128x128xf32>
    %cst = arith.constant dense<0.000000e+00> : vector<8x128xf32>
    %2 = tpu.matmul %0, %1, %cst {dimension_numbers = #tpu.dot_dimension_numbers<[1], [0], [0], [1], [0, 0, 1, 1], [], []>} : vector<8x128xf32>, vector<128x128xf32>, vector<8x128xf32> -> vector<8x128xf32>
    %c0_3 = arith.constant 0 : index
    %c0_4 = arith.constant 0 : index
    %3 = vector.load %arg3[%c0_3, %c0_4] : memref<1x128xf32, #tpu.memory_space<vmem>>, vector<1x128xf32>
    %4 = vector.broadcast %3 : vector<1x128xf32> to vector<8x128xf32>
    %5 = arith.addf %2, %4 : vector<8x128xf32>
    %6 = math.tanh %5 : vector<8x128xf32>
    %c0_5 = arith.constant 0 : index
    %c0_6 = arith.constant 0 : index
    %7 = vector.load %arg4[%c0_5, %c0_6] : memref<128x4xf32, #tpu.memory_space<vmem>>, vector<128x4xf32>
    %cst_7 = arith.constant dense<0.000000e+00> : vector<8x4xf32>
    %8 = tpu.matmul %6, %7, %cst_7 {dimension_numbers = #tpu.dot_dimension_numbers<[1], [0], [0], [1], [0, 0, 1, 1], [], []>} : vector<8x128xf32>, vector<128x4xf32>, vector<8x4xf32> -> vector<8x4xf32>
    %c0_8 = arith.constant 0 : index
    %c0_9 = arith.constant 0 : index
    %9 = vector.load %arg5[%c0_8, %c0_9] : memref<1x4xf32, #tpu.memory_space<vmem>>, vector<1x4xf32>
    %10 = vector.broadcast %9 : vector<1x4xf32> to vector<8x4xf32>
    %11 = arith.addf %8, %10 : vector<8x4xf32>
    %c0_10 = arith.constant 0 : index
    %c0_11 = arith.constant 0 : index
    %12 = vector.load %arg6[%c0_10, %c0_11] : memref<8x4xf32, #tpu.memory_space<vmem>>, vector<8x4xf32>
    tpu.vector_store %arg6[%c0_10, %c0_11], %11 {strides = array<i32>} : memref<8x4xf32, #tpu.memory_space<vmem>>, vector<8x4xf32>,
    return
  }
  func.func @transform_0(%arg0: i32) -> (i32, i32) {
    %c0_i32 = arith.constant 0 : i32
    %c0_i32_0 = arith.constant 0 : i32
    return %arg0, %c0_i32 : i32, i32
  }
  func.func @transform_1(%arg0: i32) -> (i32, i32) {
    %c0_i32 = arith.constant 0 : i32
    %c0_i32_0 = arith.constant 0 : i32
    %c0_i32_1 = arith.constant 0 : i32
    return %c0_i32, %c0_i32_0 : i32, i32
  }
  func.func @transform_2(%arg0: i32) -> (i32, i32) {
    %c0_i32 = arith.constant 0 : i32
    %c0_i32_0 = arith.constant 0 : i32
    %c0_i32_1 = arith.constant 0 : i32
    return %c0_i32, %c0_i32_0 : i32, i32
  }
  func.func @transform_3(%arg0: i32) -> (i32, i32) {
    %c0_i32 = arith.constant 0 : i32
    %c0_i32_0 = arith.constant 0 : i32
    %c0_i32_1 = arith.constant 0 : i32
    return %c0_i32, %c0_i32_0 : i32, i32
  }
  func.func @transform_4(%arg0: i32) -> (i32, i32) {
    %c0_i32 = arith.constant 0 : i32
    %c0_i32_0 = arith.constant 0 : i32
    %c0_i32_1 = arith.constant 0 : i32
    return %c0_i32, %c0_i32_0 : i32, i32
  }
  func.func @transform_5(%arg0: i32) -> (i32, i32) {
    %c0_i32 = arith.constant 0 : i32
    %c0_i32_0 = arith.constant 0 : i32
    return %arg0, %c0_i32 : i32, i32
  }
}

</mosaic_0001>

<bundles_post_ra>
// kernel: tpu_custom_call.1
= control target key start
LH: loop header
LB: loop body
LE: loop exit
PB: predicated region body
PF: predicated region fallthrough
CT: control target
= control target key end

     0   :  { %10 = vsyncpa [#allocation3], 0  ;;  %s992_s0 = inlined_call_operand.hbm [shape: f32[16,128], index: 0, kind: input, shape index: {}]   ;;  %s993_s1 = inlined_call_operand.vmem [shape: f32[128,128], index: 1, kind: input, shape index: {}]   ;;  %s994_s2 = inlined_call_operand.vmem [shape: f32[1,128], index: 2, kind: input, shape index: {}]   ;;  %s995_s3 = inlined_call_operand.vmem [shape: f32[128,4], index: 3, kind: input, shape index: {}]   ;;  %s996_s4 = inlined_call_operand.vmem [shape: f32[1,4], index: 4, kind: input, shape index: {}]   ;;  %s997_s5 = inlined_call_operand.vmem [shape: f32[16,4], index: 5, kind: output, shape index: {}]  }
   0x1   :  { %12 = vsyncpa [#allocation3 + $0x1], 0  ;;  %s751_s18 = smov 0   ;;  %s753_s19 = smov 0  }
   0x2   :  { %s755_s20 = smov 0   ;;  %s757_s21 = smov 0  }
   0x3 LB: > { %s770_s22 = sadd.s32 4294967295, %s716_s21   ;;  %s773_s23 = sadd.s32 1, %s716_s21   ;;  %s716_s21 = sphi %s757_s21, %s1007_s21   ;;  %s712_s20 = sphi %s755_s20, %s1006_s20   ;;  %s708_s19 = sphi %s753_s19, %s1005_s19   ;;  %s704_s18 = sphi %s751_s18, %s1004_s18  }
   0x4   : > { %s22_s24 = ssub.s32 %s716_s21, %s773_s23  ;;  %s25_s25 = sadd.s32 1, %s712_s20 }
   0x5   : > { %p23_p0 = scmp.eq.s32.totalorder %s22_s24, 0  ;;  %p32_p1 = scmp.ne.s32.totalorder %s712_s20, %s708_s19 }
   0x6   : > { %p33_p2 = scmp.eq.s32.totalorder %s716_s21, 0  ;;  %p38_p3 = scmp.ne.s32.totalorder %s708_s19, %s704_s18 }
   0x7   : > { %s783_s26 = scalar_select %p23_p0, %s712_s20, %s25_s25  }
   0x8   : > { %p34_p4 = por %p33_p2, %p32_p1  ;;  %p39_p5 = scmp.eq.s32.totalorder %s770_s22, 0 }
   0x9   : > { %p617_p6 = scmp.lt.s32.totalorder %s716_s21, 2  ;;  %s184_s28 = sand.u32 1, %s712_s20  }
   0xa   : > { %p787_p7 = por %p39_p5, %p38_p3  ;;  %s498_s29 = sshll.u32 %s184_s28, 3 }
   0xb   : > { %s499_s30 = sshll.u32 %s716_s21, 7  ;;  %s188_s9 = scalar_lea.vmem [#allocation2], %s498_s29 }
   0xc   : > { %s999_s27 = scalar_select %p787_p7, 1, 0 }
   0xd   : > { %s796_s8 = scalar_lea.hbm %s992_s0, %s499_s30  ;;  %s195_s10 = sshll.u32 %s188_s9, 4  ;;  %s798_s10 = int_to_ptr.vmem [resolvable:$true] %s195_s10 }
   0xe   : > { %p800_p8 = pnand %p617_p6, %p34_p4  ;;  %s185_s12 = scalar_lea.sflag [#allocation3], %s184_s28 }
   0xf   : > { %s654_s13 = scalar_lea.hbm %s796_s8, 128  ;;  %s659_s16 = scalar_lea.hbm %s992_s0, 256 }
  0x10   : > { %p655_p11 = scmp.ne.s32.totalorder %s796_s8, %s654_s13  ;;  %p656_p12 = pneg %p800_p8 }
  0x11   : > { %p660_p1 = scmp.lt.s32.totalorder %s796_s8, %s992_s0  ;;  %p661_p2 = scmp.lt.s32.totalorder %s659_s16, %s654_s13 }
  0x12   : > { %p657_p13 = pnand %p656_p12, %p655_p11 }
  0x13   : > { %p662_p3 = por %p661_p2, %p660_p1 }
  0x14   : > { %p658_p0 = pneg %p657_p13 }
  0x16   : > { %p663_p4 = pnand %p662_p3, %p658_p0 }
  0x18   : > { %666 = shalt.err (!%p663_p4)
}
  0x19   : > { %s667_s24 = scalar_lea.vmem %s798_s10, 128  ;;  %s718_s25 = smov [#allocation2]  }
  0x1a   : > { %p668_p5 = scmp.ne.s32.totalorder %s798_s10, %s667_s24  ;;  %s672_s28 = sshll.u32 %s718_s25, 4  ;;  %s673_s28 = int_to_ptr.vmem [resolvable:$false] %s672_s28 }
  0x1b   : > { %s674_s29 = scalar_lea.vmem %s673_s28, 256  ;;  %p675_p13 = scmp.lt.s32.totalorder %s798_s10, %s673_s28 }
  0x1c   : > { %p670_p6 = pnand %p668_p5, %p656_p12  ;;  %p676_p9 = scmp.lt.s32.totalorder %s674_s29, %s667_s24 }
  0x1e   : > { %p671_p11 = pneg %p670_p6  ;;  %p677_p10 = por %p676_p9, %p675_p13 }
  0x20   : > { %p678_p7 = pnand %p677_p10, %p671_p11 }
  0x22   : > { %681 = shalt.err (!%p678_p7)
}
  0x23   : > { %616 = dma.hbm_to_vmem [thread:$0]  (!%p800_p8), %s796_s8, 128, %s798_s10, %s185_s12  }
  0x24   : > { %p1001_p0 = scmp.lt.s32.totalorder %s716_s21, 3  ;;  %p1002_p1 = scmp.ge.s32.totalorder %s716_s21, 1 }
  0x26   : > { %p201_p12 = pnand %p1002_p1, %p1001_p0 }
  0x27   : > { %s206_s30 = sand.u32 (!%p201_p12), 1, %s708_s19   ;;  %p1003_p7 = scmp.ne.s32.totalorder (!%p201_p12), %s999_s27, 0 }
  0x28   : > { %204 = sbr.rel (%p201_p12) target bundleno = 485 (0x1e5), region = 40  ;;  %s829_s6 = sshll.u32 (!%p201_p12), %s206_s30, 3 }
  0x29   : > { %s207_s7 = scalar_lea.sflag (!%p201_p12), [#allocation3], %s206_s30  ;;  %s210_s9 = scalar_lea.vmem (!%p201_p12), [#allocation2], %s829_s6 }
  0x2d   : > { %699 = dma.done.wait (%p1003_p7), %s207_s7, 128  }
  0x2e   : > { %701 = vsyncadd (%p1003_p7), %s207_s7, 4294967168  ;;  %v719_v0 = vmov 0.0   ;;  %vm720_vm0 = vmmov 0   ;;  %v256_v1 = vld [vmem:[%s993_s1 + $0x78] sm:$0xff]  ;;  %v255_v2 = vld [vmem:[%s993_s1 + $0x70] sm:$0xff]  ;;  %p236_p8 = scmp.lt.s32.totalorder %s770_s22, 1 }
  0x2f   : > { %541 = vmatprep.subr.mxu0 %v719_v0  ;;  %573 = vmatprep.mubr.msk.f32.mxu0 %vm720_vm0, %v719_v0  ;;  %v254_v3 = vld [vmem:[%s993_s1 + $0x68] sm:$0xff]  ;;  %v253_v4 = vld [vmem:[%s993_s1 + $0x60] sm:$0xff]  ;;  %v350_v5 = vld [vmem:[%s995_s3 + $0x78] sm:$0xff]  ;;  %vm428_vm1 = vcmask 31744  }
  0x30   : > { %576 = vmatprep.subr.mxu1 %v719_v0  ;;  %608 = vmatprep.mubr.msk.f32.mxu1 %vm720_vm0, %v719_v0  ;;  %v252_v6 = vld [vmem:[%s993_s1 + $0x58] sm:$0xff]  ;;  %v349_v7 = vld [vmem:[%s995_s3 + $0x70] sm:$0xff]  ;;  %v348_v8 = vld [vmem:[%s995_s3 + $0x68] sm:$0xff]  ;;  %s1009_s22 = smov (!%p236_p8, %s770_s22), 1 }
  0x31   : > { %542 = vmatpush3.msra.mxu0 %v256_v1  ;;  %577 = vmatpush3.msra.mxu1 %v350_v5  ;;  %v251_v9 = vld [vmem:[%s993_s1 + $0x50] sm:$0xff]  ;;  %v347_v10 = vld [vmem:[%s995_s3 + $0x60] sm:$0xff]  ;;  %v250_v11 = vld [vmem:[%s993_s1 + $0x48] sm:$0xff]  ;;  %s502_s17 = sshll.u32 %s1009_s22, 3 }
  0x32   : > { %543 = vmatprep.subr.mxu0 %v719_v0  ;;  %578 = vmatprep.subr.mxu1 %v719_v0  ;;  %v346_v12 = vld [vmem:[%s995_s3 + $0x58] sm:$0xff]  ;;  %v249_v13 = vld [vmem:[%s993_s1 + $0x40] sm:$0xff]  ;;  %v345_v14 = vld [vmem:[%s995_s3 + $0x50] sm:$0xff] }
  0x33   : > { %544 = vmatpush3.msra.mxu0 %v255_v2  ;;  %579 = vmatpush3.msra.mxu1 %v349_v7  ;;  %v248_v15 = vld [vmem:[%s993_s1 + $0x38] sm:$0xff]  ;;  %v344_v16 = vld [vmem:[%s995_s3 + $0x48] sm:$0xff]  ;;  %v247_v17 = vld [vmem:[%s993_s1 + $0x30] sm:$0xff] }
  0x34   : > { %545 = vmatprep.subr.mxu0 %v719_v0  ;;  %580 = vmatprep.subr.mxu1 %v719_v0  ;;  %v246_v18 = vld [vmem:[%s993_s1 + $0x28] sm:$0xff]  ;;  %v245_v19 = vld [vmem:[%s993_s1 + $0x20] sm:$0xff]  ;;  %v244_v20 = vld [vmem:[%s993_s1 + $0x18] sm:$0xff] }
  0x35   : > { %546 = vmatpush3.msra.mxu0 %v254_v3  ;;  %581 = vmatpush3.msra.mxu1 %v348_v8  ;;  %v243_v21 = vld [vmem:[%s993_s1 + $0x10] sm:$0xff]  ;;  %v242_v22 = vld [vmem:[%s993_s1 + $0x8] sm:$0xff]  ;;  %v241_v23 = vld [vmem:[%s993_s1] sm:$0xff] }
  0x36   : > { %547 = vmatprep.subr.mxu0 %v719_v0  ;;  %582 = vmatprep.subr.mxu1 %v719_v0  ;;  %v240_v24 = vld [vmem:[%s210_s9] sm:$0xff]  ;;  %v342_v26 = vld [vmem:[%s995_s3 + $0x38] sm:$0xff]  ;;  %v341_v27 = vld [vmem:[%s995_s3 + $0x30] sm:$0xff]  ;;  %s239_s9 = scalar_lea.vmem %s997_s5, %s502_s17 }
  0x37   : > { %548 = vmatpush3.msra.mxu0 %v253_v4  ;;  %583 = vmatpush3.msra.mxu1 %v347_v10  ;;  %v343_v25 = vld [vmem:[%s995_s3 + $0x40] sm:$0xff]  ;;  %v340_v28 = vld [vmem:[%s995_s3 + $0x28] sm:$0xff]  ;;  %v338_v30 = vld [vmem:[%s995_s3 + $0x18] sm:$0xff] }
  0x38   : > { %549 = vmatprep.subr.mxu0 %v719_v0  ;;  %584 = vmatprep.subr.mxu1 %v719_v0  ;;  %v339_v29 = vld [vmem:[%s995_s3 + $0x20] sm:$0xff]  ;;  %v337_v31 = vld [vmem:[%s995_s3 + $0x10] sm:$0xff]  ;;  %v336_v32 = vld [vmem:[%s995_s3 + $0x8] sm:$0xff] }
  0x39   : > { %550 = vmatpush3.msra.mxu0 %v252_v6  ;;  %585 = vmatpush3.msra.mxu1 %v346_v12  ;;  %v335_v33 = vld [vmem:[%s995_s3] sm:$0xff] }
  0x3a   : > { %551 = vmatprep.subr.mxu0 %v719_v0  ;;  %586 = vmatprep.subr.mxu1 %v719_v0  ;;  %v503_v34 = vld [vmem:[%s994_s2] ss:$0 sm:$0xff] }
  0x3b   : > { %552 = vmatpush3.msra.mxu0 %v251_v9  ;;  %587 = vmatpush3.msra.mxu1 %v345_v14  ;;  %v504_v39 = vld [vmem:[%s996_s4] ss:$0 sm:$0xff] }
  0x3c   : > { %553 = vmatprep.subr.mxu0 %v719_v0  ;;  %588 = vmatprep.subr.mxu1 %v719_v0 }
  0x3d   : > { %554 = vmatpush3.msra.mxu0 %v250_v11  ;;  %589 = vmatpush3.msra.mxu1 %v344_v16 }
  0x3e   : > { %555 = vmatprep.subr.mxu0 %v719_v0  ;;  %590 = vmatprep.subr.mxu1 %v719_v0 }
  0x3f   : > { %556 = vmatpush3.msra.mxu0 %v249_v13  ;;  %591 = vmatpush3.msra.mxu1 %v343_v25 }
  0x40   : > { %557 = vmatprep.subr.mxu0 %v719_v0  ;;  %592 = vmatprep.subr.mxu1 %v719_v0 }
  0x41   : > { %558 = vmatpush3.msra.mxu0 %v248_v15  ;;  %593 = vmatpush3.msra.mxu1 %v342_v26 }
  0x42   : > { %559 = vmatprep.subr.mxu0 %v719_v0  ;;  %594 = vmatprep.subr.mxu1 %v719_v0 }
  0x43   : > { %560 = vmatpush3.msra.mxu0 %v247_v17  ;;  %595 = vmatpush3.msra.mxu1 %v341_v27 }
  0x44   : > { %561 = vmatprep.subr.mxu0 %v719_v0  ;;  %596 = vmatprep.subr.mxu1 %v719_v0 }
  0x45   : > { %562 = vmatpush3.msra.mxu0 %v246_v18  ;;  %597 = vmatpush3.msra.mxu1 %v340_v28 }
  0x46   : > { %563 = vmatprep.subr.mxu0 %v719_v0  ;;  %598 = vmatprep.subr.mxu1 %v719_v0 }
  0x47   : > { %564 = vmatpush3.msra.mxu0 %v245_v19  ;;  %599 = vmatpush3.msra.mxu1 %v339_v29 }
  0x48   : > { %565 = vmatprep.subr.mxu0 %v719_v0  ;;  %600 = vmatprep.subr.mxu1 %v719_v0 }
  0x49   : > { %566 = vmatpush3.msra.mxu0 %v244_v20  ;;  %601 = vmatpush3.msra.mxu1 %v338_v30 }
  0x4a   : > { %567 = vmatprep.subr.mxu0 %v719_v0  ;;  %602 = vmatprep.subr.mxu1 %v719_v0 }
  0x4b   : > { %568 = vmatpush3.msra.mxu0 %v243_v21  ;;  %603 = vmatpush3.msra.mxu1 %v337_v31 }
  0x4c   : > { %569 = vmatprep.subr.mxu0 %v719_v0  ;;  %604 = vmatprep.subr.mxu1 %v719_v0 }
  0x4d   : > { %570 = vmatpush3.msra.mxu0 %v242_v22  ;;  %605 = vmatpush3.msra.mxu1 %v336_v32 }
  0x4e   : > { %571 = vmatprep.subr.mxu0 %v719_v0  ;;  %606 = vmatprep.subr.mxu1 %v719_v0 }
  0x4f   : > { %572 = vmatpush3.msra.mxu0 %v241_v23  ;;  %607 = vmatpush3.msra.mxu1 %v335_v33 }
  0x50   : > { %574 = vmatmul.mubr.f32.vlgmr.msra.gmra.mxu0 %v240_v24 }
 0x110   : > { %v330_v35 = vpop.f32.mrf.mxu0 }
 0x111   : > { %v331_v36 = vadd.f32 %v503_v34, %v330_v35 }
 0x112   : > { %v575_v37 = vpop.f32.mrf.mxu0 }
 0x113   : > { %652 = vtanh.f32 %v331_v36 }
 0x120   : > { %v653_v38 = vpop.eup %652 }
 0x121   : > { %609 = vmatmul.mubr.f32.vlgmr.msra.gmra.mxu1 %v653_v38 }
 0x1e1   : > { %v424_v40 = vpop.f32.mrf.mxu1 }
 0x1e2   : > { %v425_v41 = vadd.f32 %v504_v39, %v424_v40 }
 0x1e3   : > { %v610_v42 = vpop.f32.mrf.mxu1 }
 0x1e4   : > { %429 = vst.msk [vmem:[%s239_s9] sm:$0xff] %vm428_vm1, %v425_v41 }
 0x1e5 PF: > { %p15_p9 = scmp.ge.s32.totalorder %s773_s23, 4   ;;  %s1004_s18 = smov %s708_s19 }
 0x1e6   : > { %s1005_s19 = smov %s712_s20  ;;  %s1006_s20 = smov %s783_s26 }
 0x1e7   : > { %s1007_s21 = smov %s773_s23  ;;  %17 = sbr.rel (!%p15_p9) target bundleno = 3 (0x3), region = 80 }
 0x1ec   :  { %449 = vsyncpa [#allocation3], 1 }
 0x1ed   :  { %451 = vsyncpa [#allocation3 + $0x1], 1 }

// kernel: tpu_custom_call.1
= control target key start
LH: loop header
LB: loop body
LE: loop exit
PB: predicated region body
PF: predicated region fallthrough
CT: control target
= control target key end

     0   :  { %10 = vsyncpa [#allocation3], 0  ;;  %s992_s0 = inlined_call_operand.hbm [shape: f32[16,128], index: 0, kind: input, shape index: {}]   ;;  %s993_s1 = inlined_call_operand.vmem [shape: f32[128,128], index: 1, kind: input, shape index: {}]   ;;  %s994_s2 = inlined_call_operand.vmem [shape: f32[1,128], index: 2, kind: input, shape index: {}]   ;;  %s995_s3 = inlined_call_operand.vmem [shape: f32[128,4], index: 3, kind: input, shape index: {}]   ;;  %s996_s4 = inlined_call_operand.vmem [shape: f32[1,4], index: 4, kind: input, shape index: {}]   ;;  %s997_s5 = inlined_call_operand.vmem [shape: f32[16,4], index: 5, kind: output, shape index: {}]  }
   0x1   :  { %12 = vsyncpa [#allocation3 + $0x1], 0  ;;  %s751_s18 = smov 0   ;;  %s753_s19 = smov 0  }
   0x2   :  { %s755_s20 = smov 0   ;;  %s757_s21 = smov 0  }
   0x3 LB: > { %s770_s22 = sadd.s32 4294967295, %s716_s21   ;;  %s773_s23 = sadd.s32 1, %s716_s21   ;;  %s716_s21 = sphi %s757_s21, %s1007_s21   ;;  %s712_s20 = sphi %s755_s20, %s1006_s20   ;;  %s708_s19 = sphi %s753_s19, %s1005_s19   ;;  %s704_s18 = sphi %s751_s18, %s1004_s18  }
   0x4   : > { %s22_s24 = ssub.s32 %s716_s21, %s773_s23  ;;  %s25_s25 = sadd.s32 1, %s712_s20 }
   0x5   : > { %p23_p0 = scmp.eq.s32.totalorder %s22_s24, 0  ;;  %p32_p1 = scmp.ne.s32.totalorder %s712_s20, %s708_s19 }
   0x6   : > { %p33_p2 = scmp.eq.s32.totalorder %s716_s21, 0  ;;  %p38_p3 = scmp.ne.s32.totalorder %s708_s19, %s704_s18 }
   0x7   : > { %s783_s26 = scalar_select %p23_p0, %s712_s20, %s25_s25  }
   0x8   : > { %p34_p4 = por %p33_p2, %p32_p1  ;;  %p39_p5 = scmp.eq.s32.totalorder %s770_s22, 0 }
   0x9   : > { %p617_p6 = scmp.lt.s32.totalorder %s716_s21, 2  ;;  %s184_s28 = sand.u32 1, %s712_s20  }
   0xa   : > { %p787_p7 = por %p39_p5, %p38_p3  ;;  %s498_s29 = sshll.u32 %s184_s28, 3 }
   0xb   : > { %s499_s30 = sshll.u32 %s716_s21, 7  ;;  %s188_s9 = scalar_lea.vmem [#allocation2], %s498_s29 }
   0xc   : > { %s999_s27 = scalar_select %p787_p7, 1, 0 }
   0xd   : > { %s796_s8 = scalar_lea.hbm %s992_s0, %s499_s30  ;;  %s195_s10 = sshll.u32 %s188_s9, 4  ;;  %s798_s10 = int_to_ptr.vmem [resolvable:$true] %s195_s10 }
   0xe   : > { %p800_p8 = pnand %p617_p6, %p34_p4  ;;  %s185_s12 = scalar_lea.sflag [#allocation3], %s184_s28 }
   0xf   : > { %s654_s13 = scalar_lea.hbm %s796_s8, 128  ;;  %s659_s16 = scalar_lea.hbm %s992_s0, 256 }
  0x10   : > { %p655_p11 = scmp.ne.s32.totalorder %s796_s8, %s654_s13  ;;  %p656_p12 = pneg %p800_p8 }
  0x11   : > { %p660_p1 = scmp.lt.s32.totalorder %s796_s8, %s992_s0  ;;  %p661_p2 = scmp.lt.s32.totalorder %s659_s16, %s654_s13 }
  0x12   : > { %p657_p13 = pnand %p656_p12, %p655_p11 }
  0x13   : > { %p662_p3 = por %p661_p2, %p660_p1 }
  0x14   : > { %p658_p0 = pneg %p657_p13 }
  0x16   : > { %p663_p4 = pnand %p662_p3, %p658_p0 }
  0x18   : > { %666 = shalt.err (!%p663_p4)
}
  0x19   : > { %s667_s24 = scalar_lea.vmem %s798_s10, 128  ;;  %s718_s25 = smov [#allocation2]  }
  0x1a   : > { %p668_p5 = scmp.ne.s32.totalorder %s798_s10, %s667_s24  ;;  %s672_s28 = sshll.u32 %s718_s25, 4  ;;  %s673_s28 = int_to_ptr.vmem [resolvable:$false] %s672_s28 }
  0x1b   : > { %s674_s29 = scalar_lea.vmem %s673_s28, 256  ;;  %p675_p13 = scmp.lt.s32.totalorder %s798_s10, %s673_s28 }
  0x1c   : > { %p670_p6 = pnand %p668_p5, %p656_p12  ;;  %p676_p9 = scmp.lt.s32.totalorder %s674_s29, %s667_s24 }
  0x1e   : > { %p671_p11 = pneg %p670_p6  ;;  %p677_p10 = por %p676_p9, %p675_p13 }
  0x20   : > { %p678_p7 = pnand %p677_p10, %p671_p11 }
  0x22   : > { %681 = shalt.err (!%p678_p7)
}
  0x23   : > { %616 = dma.hbm_to_vmem [thread:$0]  (!%p800_p8), %s796_s8, 128, %s798_s10, %s185_s12  }
  0x24   : > { %p1001_p0 = scmp.lt.s32.totalorder %s716_s21, 3  ;;  %p1002_p1 = scmp.ge.s32.totalorder %s716_s21, 1 }
  0x26   : > { %p201_p12 = pnand %p1002_p1, %p1001_p0 }
  0x27   : > { %s206_s30 = sand.u32 (!%p201_p12), 1, %s708_s19   ;;  %p1003_p7 = scmp.ne.s32.totalorder (!%p201_p12), %s999_s27, 0 }
  0x28   : > { %204 = sbr.rel (%p201_p12) target bundleno = 485 (0x1e5), region = 40  ;;  %s829_s6 = sshll.u32 (!%p201_p12), %s206_s30, 3 }
  0x29   : > { %s207_s7 = scalar_lea.sflag (!%p201_p12), [#allocation3], %s206_s30  ;;  %s210_s9 = scalar_lea.vmem (!%p201_p12), [#allocation2], %s829_s6 }
  0x2d   : > { %699 = dma.done.wait (%p1003_p7), %s207_s7, 128  }
  0x2e   : > { %701 = vsyncadd (%p1003_p7), %s207_s7, 4294967168  ;;  %v719_v0 = vmov 0.0   ;;  %vm720_vm0 = vmmov 0   ;;  %v256_v1 = vld [vmem:[%s993_s1 + $0x78] sm:$0xff]  ;;  %v255_v2 = vld [vmem:[%s993_s1 + $0x70] sm:$0xff]  ;;  %p236_p8 = scmp.lt.s32.totalorder %s770_s22, 1 }
  0x2f   : > { %541 = vmatprep.subr.mxu0 %v719_v0  ;;  %573 = vmatprep.mubr.msk.f32.mxu0 %vm720_vm0, %v719_v0  ;;  %v254_v3 = vld [vmem:[%s993_s1 + $0x68] sm:$0xff]  ;;  %v253_v4 = vld [vmem:[%s993_s1 + $0x60] sm:$0xff]  ;;  %v350_v5 = vld [vmem:[%s995_s3 + $0x78] sm:$0xff]  ;;  %vm428_vm1 = vcmask 31744  }
  0x30   : > { %576 = vmatprep.subr.mxu1 %v719_v0  ;;  %608 = vmatprep.mubr.msk.f32.mxu1 %vm720_vm0, %v719_v0  ;;  %v252_v6 = vld [vmem:[%s993_s1 + $0x58] sm:$0xff]  ;;  %v349_v7 = vld [vmem:[%s995_s3 + $0x70] sm:$0xff]  ;;  %v348_v8 = vld [vmem:[%s995_s3 + $0x68] sm:$0xff]  ;;  %s1009_s22 = smov (!%p236_p8, %s770_s22), 1 }
  0x31   : > { %542 = vmatpush3.msra.mxu0 %v256_v1  ;;  %577 = vmatpush3.msra.mxu1 %v350_v5  ;;  %v251_v9 = vld [vmem:[%s993_s1 + $0x50] sm:$0xff]  ;;  %v347_v10 = vld [vmem:[%s995_s3 + $0x60] sm:$0xff]  ;;  %v250_v11 = vld [vmem:[%s993_s1 + $0x48] sm:$0xff]  ;;  %s502_s17 = sshll.u32 %s1009_s22, 3 }
  0x32   : > { %543 = vmatprep.subr.mxu0 %v719_v0  ;;  %578 = vmatprep.subr.mxu1 %v719_v0  ;;  %v346_v12 = vld [vmem:[%s995_s3 + $0x58] sm:$0xff]  ;;  %v249_v13 = vld [vmem:[%s993_s1 + $0x40] sm:$0xff]  ;;  %v345_v14 = vld [vmem:[%s995_s3 + $0x50] sm:$0xff] }
  0x33   : > { %544 = vmatpush3.msra.mxu0 %v255_v2  ;;  %579 = vmatpush3.msra.mxu1 %v349_v7  ;;  %v248_v15 = vld [vmem:[%s993_s1 + $0x38] sm:$0xff]  ;;  %v344_v16 = vld [vmem:[%s995_s3 + $0x48] sm:$0xff]  ;;  %v247_v17 = vld [vmem:[%s993_s1 + $0x30] sm:$0xff] }
  0x34   : > { %545 = vmatprep.subr.mxu0 %v719_v0  ;;  %580 = vmatprep.subr.mxu1 %v719_v0  ;;  %v246_v18 = vld [vmem:[%s993_s1 + $0x28] sm:$0xff]  ;;  %v245_v19 = vld [vmem:[%s993_s1 + $0x20] sm:$0xff]  ;;  %v244_v20 = vld [vmem:[%s993_s1 + $0x18] sm:$0xff] }
  0x35   : > { %546 = vmatpush3.msra.mxu0 %v254_v3  ;;  %581 = vmatpush3.msra.mxu1 %v348_v8  ;;  %v243_v21 = vld [vmem:[%s993_s1 + $0x10] sm:$0xff]  ;;  %v242_v22 = vld [vmem:[%s993_s1 + $0x8] sm:$0xff]  ;;  %v241_v23 = vld [vmem:[%s993_s1] sm:$0xff] }
  0x36   : > { %547 = vmatprep.subr.mxu0 %v719_v0  ;;  %582 = vmatprep.subr.mxu1 %v719_v0  ;;  %v240_v24 = vld [vmem:[%s210_s9] sm:$0xff]  ;;  %v342_v26 = vld [vmem:[%s995_s3 + $0x38] sm:$0xff]  ;;  %v341_v27 = vld [vmem:[%s995_s3 + $0x30] sm:$0xff]  ;;  %s239_s9 = scalar_lea.vmem %s997_s5, %s502_s17 }
  0x37   : > { %548 = vmatpush3.msra.mxu0 %v253_v4  ;;  %583 = vmatpush3.msra.mxu1 %v347_v10  ;;  %v343_v25 = vld [vmem:[%s995_s3 + $0x40] sm:$0xff]  ;;  %v340_v28 = vld [vmem:[%s995_s3 + $0x28] sm:$0xff]  ;;  %v338_v30 = vld [vmem:[%s995_s3 + $0x18] sm:$0xff] }
  0x38   : > { %549 = vmatprep.subr.mxu0 %v719_v0  ;;  %584 = vmatprep.subr.mxu1 %v719_v0  ;;  %v339_v29 = vld [vmem:[%s995_s3 + $0x20] sm:$0xff]  ;;  %v337_v31 = vld [vmem:[%s995_s3 + $0x10] sm:$0xff]  ;;  %v336_v32 = vld [vmem:[%s995_s3 + $0x8] sm:$0xff] }
  0x39   : > { %550 = vmatpush3.msra.mxu0 %v252_v6  ;;  %585 = vmatpush3.msra.mxu1 %v346_v12  ;;  %v335_v33 = vld [vmem:[%s995_s3] sm:$0xff] }
  0x3a   : > { %551 = vmatprep.subr.mxu0 %v719_v0  ;;  %586 = vmatprep.subr.mxu1 %v719_v0  ;;  %v503_v34 = vld [vmem:[%s994_s2] ss:$0 sm:$0xff] }
  0x3b   : > { %552 = vmatpush3.msra.mxu0 %v251_v9  ;;  %587 = vmatpush3.msra.mxu1 %v345_v14  ;;  %v504_v39 = vld [vmem:[%s996_s4] ss:$0 sm:$0xff] }
  0x3c   : > { %553 = vmatprep.subr.mxu0 %v719_v0  ;;  %588 = vmatprep.subr.mxu1 %v719_v0 }
  0x3d   : > { %554 = vmatpush3.msra.mxu0 %v250_v11  ;;  %589 = vmatpush3.msra.mxu1 %v344_v16 }
  0x3e   : > { %555 = vmatprep.subr.mxu0 %v719_v0  ;;  %590 = vmatprep.subr.mxu1 %v719_v0 }
  0x3f   : > { %556 = vmatpush3.msra.mxu0 %v249_v13  ;;  %591 = vmatpush3.msra.mxu1 %v343_v25 }
  0x40   : > { %557 = vmatprep.subr.mxu0 %v719_v0  ;;  %592 = vmatprep.subr.mxu1 %v719_v0 }
  0x41   : > { %558 = vmatpush3.msra.mxu0 %v248_v15  ;;  %593 = vmatpush3.msra.mxu1 %v342_v26 }
  0x42   : > { %559 = vmatprep.subr.mxu0 %v719_v0  ;;  %594 = vmatprep.subr.mxu1 %v719_v0 }
  0x43   : > { %560 = vmatpush3.msra.mxu0 %v247_v17  ;;  %595 = vmatpush3.msra.mxu1 %v341_v27 }
  0x44   : > { %561 = vmatprep.subr.mxu0 %v719_v0  ;;  %596 = vmatprep.subr.mxu1 %v719_v0 }
  0x45   : > { %562 = vmatpush3.msra.mxu0 %v246_v18  ;;  %597 = vmatpush3.msra.mxu1 %v340_v28 }
  0x46   : > { %563 = vmatprep.subr.mxu0 %v719_v0  ;;  %598 = vmatprep.subr.mxu1 %v719_v0 }
  0x47   : > { %564 = vmatpush3.msra.mxu0 %v245_v19  ;;  %599 = vmatpush3.msra.mxu1 %v339_v29 }
  0x48   : > { %565 = vmatprep.subr.mxu0 %v719_v0  ;;  %600 = vmatprep.subr.mxu1 %v719_v0 }
  0x49   : > { %566 = vmatpush3.msra.mxu0 %v244_v20  ;;  %601 = vmatpush3.msra.mxu1 %v338_v30 }
  0x4a   : > { %567 = vmatprep.subr.mxu0 %v719_v0  ;;  %602 = vmatprep.subr.mxu1 %v719_v0 }
  0x4b   : > { %568 = vmatpush3.msra.mxu0 %v243_v21  ;;  %603 = vmatpush3.msra.mxu1 %v337_v31 }
  0x4c   : > { %569 = vmatprep.subr.mxu0 %v719_v0  ;;  %604 = vmatprep.subr.mxu1 %v719_v0 }
  0x4d   : > { %570 = vmatpush3.msra.mxu0 %v242_v22  ;;  %605 = vmatpush3.msra.mxu1 %v336_v32 }
  0x4e   : > { %571 = vmatprep.subr.mxu0 %v719_v0  ;;  %606 = vmatprep.subr.mxu1 %v719_v0 }
  0x4f   : > { %572 = vmatpush3.msra.mxu0 %v241_v23  ;;  %607 = vmatpush3.msra.mxu1 %v335_v33 }
  0x50   : > { %574 = vmatmul.mubr.f32.vlgmr.msra.gmra.mxu0 %v240_v24 }
 0x110   : > { %v330_v35 = vpop.f32.mrf.mxu0 }
 0x111   : > { %v331_v36 = vadd.f32 %v503_v34, %v330_v35 }
 0x112   : > { %v575_v37 = vpop.f32.mrf.mxu0 }
 0x113   : > { %652 = vtanh.f32 %v331_v36 }
 0x120   : > { %v653_v38 = vpop.eup %652 }
 0x121   : > { %609 = vmatmul.mubr.f32.vlgmr.msra.gmra.mxu1 %v653_v38 }
 0x1e1   : > { %v424_v40 = vpop.f32.mrf.mxu1 }
 0x1e2   : > { %v425_v41 = vadd.f32 %v504_v39, %v424_v40 }
 0x1e3   : > { %v610_v42 = vpop.f32.mrf.mxu1 }
 0x1e4   : > { %429 = vst.msk [vmem:[%s239_s9] sm:$0xff] %vm428_vm1, %v425_v41 }
 0x1e5 PF: > { %p15_p9 = scmp.ge.s32.totalorder %s773_s23, 4   ;;  %s1004_s18 = smov %s708_s19 }
 0x1e6   : > { %s1005_s19 = smov %s712_s20  ;;  %s1006_s20 = smov %s783_s26 }
 0x1e7   : > { %s1007_s21 = smov %s773_s23  ;;  %17 = sbr.rel (!%p15_p9) target bundleno = 3 (0x3), region = 80 }
 0x1ec   :  { %449 = vsyncpa [#allocation3], 1 }
 0x1ed   :  { %451 = vsyncpa [#allocation3 + $0x1], 1 }

</bundles_post_ra>
